<compile_context>
chip_gen: v5e
topology: v5e:2x2
jax: 0.10.0
libtpu: 0.0.40
codegen_flags: <defaults>
</compile_context>

<pallas_src>
import jax
import jax.numpy as jnp
from jax.experimental import pallas as pl
from jax.experimental.pallas import tpu as pltpu


def _round_up(x, m):
    return ((x + m - 1) // m) * m


def _vmem_capacity_bytes():
    try:
        return int(pltpu.get_tpu_info().vmem_capacity_bytes)
    except Exception:
        return 64 * 1024 * 1024          # conservative fallback (v7x-sized)


def decoder_kernel(x_ref, w1_ref, b1_ref, w2_ref, b2_ref, o_ref, acc_ref):
    """Grid = (batch_tiles, hidden_tiles). acc_ref is a (tm, D_out_p) f32 scratch."""
    k = pl.program_id(1)

    @pl.when(k == 0)
    def _():
        # Seed the accumulator with b2 so the epilogue is a pure cast+store.
        acc_ref[...] = jnp.broadcast_to(b2_ref[...].astype(jnp.float32),
                                        acc_ref.shape)

    # First matmul: current (K_p, tk) column slice of W1 -> (tm, tk), f32 acc.
    h = jnp.dot(x_ref[...], w1_ref[...], preferred_element_type=jnp.float32)
    h = jnp.maximum(h + b1_ref[...], 0.0)            # bias + ReLU in f32 (VPU)

    # Second matmul: contract the tk hidden columns against the matching
    # (tk, D_out_p) slice of W2, accumulating in f32.
    # Note: h is rounded to the weight/compute dtype (bf16 when enabled); this
    # is the intentional MXU-friendly choice and loosens tolerance vs f32 ref.
    acc_ref[...] += jnp.dot(h.astype(w2_ref.dtype), w2_ref[...],
                            preferred_element_type=jnp.float32)

    @pl.when(k == pl.num_programs(1) - 1)
    def _():
        o_ref[...] = acc_ref[...].astype(o_ref.dtype)


def prepare_decoder_params(w1, b1, w2, b2, *, compute_dtype=None):
    """Pad weights to lane-dense shapes and cast once (hoisted out of the call path).

    w1: (D_in, D_in); b1: (D_in,); w2: (D_in, D_out); b2: (D_out,)
    compute_dtype: dtype used on the MXU (e.g. jnp.bfloat16). Biases stay f32.
    """
    D_in = w1.shape[0]
    D_out = w2.shape[1]
    if compute_dtype is None:
        compute_dtype = w1.dtype
    compute_dtype = jnp.dtype(compute_dtype)

    # Hidden/contraction dim: multiple of 512 when large so tk=512 always
    # divides it (avoids degenerate tk shrinkage); otherwise multiple of 128.
    K_p = _round_up(D_in, 512) if D_in > 512 else _round_up(D_in, 128)
    D_out_p = _round_up(D_out, 128)

    w1p = jnp.pad(w1.astype(compute_dtype), ((0, K_p - D_in), (0, K_p - D_in)))
    b1p = jnp.pad(b1.astype(jnp.float32), ((0, K_p - D_in),)).reshape(1, K_p)
    w2p = jnp.pad(w2.astype(compute_dtype), ((0, K_p - D_in), (0, D_out_p - D_out)))
    b2p = jnp.pad(b2.astype(jnp.float32), ((0, D_out_p - D_out),)).reshape(1, D_out_p)

    return {
        "w1": w1p, "b1": b1p, "w2": w2p, "b2": b2p,
        "d_in": D_in, "d_out": D_out,
        "compute_dtype": compute_dtype,
    }


def decoder_forward(x, params, *, tm=None, tk=None):
    """x: (B, D_in) -> (B, D_out). params from prepare_decoder_params."""
    w1p, b1p, w2p, b2p = params["w1"], params["b1"], params["w2"], params["b2"]
    D_in, D_out = params["d_in"], params["d_out"]
    compute_dtype = params["compute_dtype"]

    B = x.shape[0]
    out_dtype = x.dtype
    K_p = w1p.shape[0]
    D_out_p = w2p.shape[1]

    cd_isz = compute_dtype.itemsize
    out_isz = jnp.dtype(out_dtype).itemsize
    sub = max(8, 32 // cd_isz)            # sublane multiple: 8 (f32) / 16 (bf16)

    vmem_cap = _vmem_capacity_bytes()
    budget = int(vmem_cap * 0.75)         # leave headroom for Mosaic scratch

    # ---- row tile (parallel axis) -------------------------------------------
    if tm is None:
        # Big-VMEM / single-TC chips (v5e, v6e: 128 MiB) -> go wide to cut
        # weight re-streaming; small-VMEM / 2-TC chips (v7x: 64 MiB) -> 512.
        cap = 1024 if vmem_cap >= (96 << 20) else 512
        tm = min(_round_up(B, sub), cap)
    tm = max(sub, _round_up(tm, sub))
    # v7x-like: try to expose >= 2 parallel grid steps for the 2 TensorCores.
    if vmem_cap <= (64 << 20) and _round_up(B, tm) // tm < 2 and tm > sub:
        tm = max(sub, _round_up(tm // 2, sub))

    # ---- hidden-dim tile (reduction axis) -----------------------------------
    if tk is not None:
        tk = min(_round_up(tk, 128), K_p)
        cands = [tk] if K_p % tk == 0 else [128]
    else:
        # Prefer num_k == 1 (weights become grid-constant -> single-buffered).
        cands = [K_p] + [t for t in (4096, 2048, 1024, 512, 256, 128)
                         if t < K_p and K_p % t == 0]

    def vmem_need(tm_, tk_):
        nbuf_w = 1 if (K_p // tk_) == 1 else 2
        return (2 * tm_ * K_p * cd_isz                 # x tile (double-buffered)
                + nbuf_w * K_p * tk_ * cd_isz          # W1 column tile
                + nbuf_w * 8 * tk_ * 4                 # b1 slice (f32, sublane-padded)
                + nbuf_w * tk_ * D_out_p * cd_isz      # W2 row tile
                + 8 * D_out_p * 4                      # b2 (f32)
                + 2 * tm_ * D_out_p * out_isz          # output tile
                + tm_ * D_out_p * 4)                   # f32 accumulator scratch

    chosen = None
    tm_try = tm
    while chosen is None:
        for t in cands:
            if vmem_need(tm_try, t) <= budget:
                chosen = (tm_try, t)
                break
        if chosen is None:
            if tm_try <= sub:
                chosen = (sub, cands[-1])              # best effort
            else:
                tm_try = max(sub, _round_up(tm_try // 2, sub))
    tm, tk = chosen
    num_k = K_p // tk
    B_p = _round_up(B, tm)
    n_btiles = B_p // tm

    # ---- per-call padding: x only (weights pre-padded at prepare time) ------
    xp = jnp.pad(x.astype(compute_dtype), ((0, B_p - B), (0, K_p - D_in)))

    # ---- specs ---------------------------------------------------------------
    weights_const = (num_k == 1)           # W1/W2/b1 index_maps constant over grid

    def spec(shape, imap, *, single=False):
        if single:
            return pl.BlockSpec(shape, imap, pipeline_mode=pl.Buffered(1))
        return pl.BlockSpec(shape, imap)

    in_specs = [
        spec((tm, K_p), lambda i, k: (i, 0)),                          # x row tile
        spec((K_p, tk), lambda i, k: (0, k), single=weights_const),     # W1 col tile
        spec((1, tk), lambda i, k: (0, k), single=weights_const),       # b1 slice
        spec((tk, D_out_p), lambda i, k: (k, 0), single=weights_const),  # W2 row tile
        spec((1, D_out_p), lambda i, k: (0, 0), single=True),           # b2 (constant)
    ]
    out_specs = pl.BlockSpec((tm, D_out_p), lambda i, k: (i, 0))

    needed = vmem_need(tm, tk)
    vmem_limit = int(min(int(vmem_cap * 0.85),
                         max(needed + (4 << 20), 16 << 20)))

    # Weights are re-fetched once per batch tile when the reduction axis moves.
    restream = n_btiles if num_k > 1 else 1
    cost = pl.CostEstimate(
        flops=2 * B_p * K_p * (K_p + D_out_p),
        transcendentals=0,
        bytes_accessed=(xp.size * xp.dtype.itemsize
                        + restream * (w1p.size * w1p.dtype.itemsize
                                      + b1p.size * b1p.dtype.itemsize
                                      + w2p.size * w2p.dtype.itemsize)
                        + b2p.size * b2p.dtype.itemsize
                        + B_p * D_out_p * out_isz),
    )

    out_p = pl.pallas_call(
        decoder_kernel,
        out_shape=jax.ShapeDtypeStruct((B_p, D_out_p), out_dtype),
        grid_spec=pltpu.PrefetchScalarGridSpec(
            num_scalar_prefetch=0,
            grid=(n_btiles, num_k),
            in_specs=in_specs,
            out_specs=out_specs,
            scratch_shapes=[pltpu.VMEM((tm, D_out_p), jnp.float32)],
        ),
        compiler_params=pltpu.CompilerParams(
            dimension_semantics=("parallel", "arbitrary"),
            vmem_limit_bytes=vmem_limit,
        ),
        cost_estimate=cost,
    )(xp, w1p, b1p, w2p, b2p)

    return out_p[:B, :D_out]


def init_decoder_params(key, input_dim, output_dim, dtype=jnp.float32):
    # Mimics PyTorch nn.Linear default init: U(-1/sqrt(fan_in), 1/sqrt(fan_in)).
    k1, k2, k3, k4 = jax.random.split(key, 4)
    bound = 1.0 / (input_dim ** 0.5)
    w1 = jax.random.uniform(k1, (input_dim, input_dim), dtype, -bound, bound)
    b1 = jax.random.uniform(k2, (input_dim,), dtype, -bound, bound)
    w2 = jax.random.uniform(k3, (input_dim, output_dim), dtype, -bound, bound)
    b2 = jax.random.uniform(k4, (output_dim,), dtype, -bound, bound)
    return w1, b1, w2, b2


if __name__ == "__main__":
    key = jax.random.PRNGKey(0)
    kx, kp = jax.random.split(key)

    batch, input_dim, output_dim = 8, 32, 16
    x = jax.random.normal(kx, (batch, input_dim), dtype=jnp.float32)
    w1, b1, w2, b2 = init_decoder_params(kp, input_dim, output_dim)

    # Reference (same math as the PyTorch module) in plain JAX (f32).
    ref = jnp.maximum(x @ w1 + b1, 0.0) @ w2 + b2

    # --- f32 compute path (bit-faithful to the reference) --------------------
    params_f32 = prepare_decoder_params(w1, b1, w2, b2)
    out_f32 = jax.block_until_ready(decoder_forward(x, params_f32))
    assert out_f32.shape == (batch, output_dim)
    assert jnp.allclose(out_f32, ref, atol=1e-5, rtol=1e-5)

    # --- bf16 compute path (MXU-native on v5e/v6e/v7x, f32 accumulation) -----
    # Activations/weights are rounded to bf16 on the MXU, so tolerance is loose.
    params_bf16 = prepare_decoder_params(w1, b1, w2, b2,
                                         compute_dtype=jnp.bfloat16)
    out_bf16 = jax.block_until_ready(decoder_forward(x, params_bf16))
    assert out_bf16.shape == (batch, output_dim)
    assert jnp.allclose(out_bf16, ref, atol=1e-1, rtol=1e-1)

    print("KERNEL_OK")
</pallas_src>

<mosaic_0001>
module attributes {stable_mosaic.version = 11 : i64} {
  func.func @decoder_kernel(%arg0: i32, %arg1: i32, %arg2: memref<8x128xf32, #tpu.memory_space<vmem>>, %arg3: memref<128x128xf32, #tpu.memory_space<vmem>>, %arg4: memref<1x128xf32, #tpu.memory_space<vmem>>, %arg5: memref<128x128xf32, #tpu.memory_space<vmem>>, %arg6: memref<1x128xf32, #tpu.memory_space<vmem>>, %arg7: memref<8x128xf32, #tpu.memory_space<vmem>>, %arg8: memref<8x128xf32, #tpu.memory_space<vmem>>) attributes {dimension_semantics = [#tpu.dimension_semantics<parallel>, #tpu.dimension_semantics<arbitrary>], iteration_bounds = array<i64: 1, 1>, scalar_prefetch = 0 : i64, scratch_operands = 1 : i64, tpu.core_type = #tpu.core_type<tc>, window_params = [{transform_indices = @transform_0, window_bounds = array<i64: 8, 128>}, {pipeline_mode = #tpu.pipeline_mode<synchronous>, transform_indices = @transform_1, window_bounds = array<i64: 128, 128>}, {pipeline_mode = #tpu.pipeline_mode<synchronous>, transform_indices = @transform_2, window_bounds = array<i64: 1, 128>}, {pipeline_mode = #tpu.pipeline_mode<synchronous>, transform_indices = @transform_3, window_bounds = array<i64: 128, 128>}, {pipeline_mode = #tpu.pipeline_mode<synchronous>, transform_indices = @transform_4, window_bounds = array<i64: 1, 128>}, {transform_indices = @transform_5, window_bounds = array<i64: 8, 128>}]} {
    %c0_i32 = arith.constant 0 : i32
    %0 = arith.cmpi eq, %arg1, %c0_i32 : i32
    %1 = arith.extui %0 : i1 to i32
    %c0_i32_0 = arith.constant 0 : i32
    %2 = arith.cmpi ne, %1, %c0_i32_0 : i32
    scf.if %2 {
      %c0_16 = arith.constant 0 : index
      %c0_17 = arith.constant 0 : index
      %19 = vector.load %arg6[%c0_16, %c0_17] : memref<1x128xf32, #tpu.memory_space<vmem>>, vector<1x128xf32>
      %20 = vector.shape_cast %19 : vector<1x128xf32> to vector<1x128xf32>
      %21 = vector.broadcast %20 : vector<1x128xf32> to vector<8x128xf32>
      %c0_18 = arith.constant 0 : index
      %c0_19 = arith.constant 0 : index
      %22 = vector.load %arg8[%c0_18, %c0_19] : memref<8x128xf32, #tpu.memory_space<vmem>>, vector<8x128xf32>
      tpu.vector_store %arg8[%c0_18, %c0_19], %21 {strides = array<i32>} : memref<8x128xf32, #tpu.memory_space<vmem>>, vector<8x128xf32>,
    } else {
    }
    %c0 = arith.constant 0 : index
    %c0_1 = arith.constant 0 : index
    %3 = vector.load %arg2[%c0, %c0_1] : memref<8x128xf32, #tpu.memory_space<vmem>>, vector<8x128xf32>
    %c0_2 = arith.constant 0 : index
    %c0_3 = arith.constant 0 : index
    %4 = vector.load %arg3[%c0_2, %c0_3] : memref<128x128xf32, #tpu.memory_space<vmem>>, vector<128x128xf32>
    %cst = arith.constant dense<0.000000e+00> : vector<8x128xf32>
    %5 = tpu.matmul %3, %4, %cst {dimension_numbers = #tpu.dot_dimension_numbers<[1], [0], [0], [1], [0, 0, 1, 1], [], []>} : vector<8x128xf32>, vector<128x128xf32>, vector<8x128xf32> -> vector<8x128xf32>
    %c0_4 = arith.constant 0 : index
    %c0_5 = arith.constant 0 : index
    %6 = vector.load %arg4[%c0_4, %c0_5] : memref<1x128xf32, #tpu.memory_space<vmem>>, vector<1x128xf32>
    %7 = vector.broadcast %6 : vector<1x128xf32> to vector<8x128xf32>
    %8 = arith.addf %5, %7 : vector<8x128xf32>
    %cst_6 = arith.constant 0.000000e+00 : f32
    %9 = vector.broadcast %cst_6 : f32 to vector<8x128xf32>
    %10 = arith.maximumf %8, %9 : vector<8x128xf32>
    %c0_7 = arith.constant 0 : index
    %c0_8 = arith.constant 0 : index
    %11 = vector.load %arg8[%c0_7, %c0_8] : memref<8x128xf32, #tpu.memory_space<vmem>>, vector<8x128xf32>
    %c0_9 = arith.constant 0 : index
    %c0_10 = arith.constant 0 : index
    %12 = vector.load %arg5[%c0_9, %c0_10] : memref<128x128xf32, #tpu.memory_space<vmem>>, vector<128x128xf32>
    %cst_11 = arith.constant dense<0.000000e+00> : vector<8x128xf32>
    %13 = tpu.matmul %10, %12, %cst_11 {dimension_numbers = #tpu.dot_dimension_numbers<[1], [0], [0], [1], [0, 0, 1, 1], [], []>} : vector<8x128xf32>, vector<128x128xf32>, vector<8x128xf32> -> vector<8x128xf32>
    %14 = arith.addf %11, %13 : vector<8x128xf32>
    %c0_12 = arith.constant 0 : index
    %c0_13 = arith.constant 0 : index
    %15 = vector.load %arg8[%c0_12, %c0_13] : memref<8x128xf32, #tpu.memory_space<vmem>>, vector<8x128xf32>
    tpu.vector_store %arg8[%c0_12, %c0_13], %14 {strides = array<i32>} : memref<8x128xf32, #tpu.memory_space<vmem>>, vector<8x128xf32>,
    %c0_i32_14 = arith.constant 0 : i32
    %16 = arith.cmpi eq, %arg1, %c0_i32_14 : i32
    %17 = arith.extui %16 : i1 to i32
    %c0_i32_15 = arith.constant 0 : i32
    %18 = arith.cmpi ne, %17, %c0_i32_15 : i32
    scf.if %18 {
      %c0_16 = arith.constant 0 : index
      %c0_17 = arith.constant 0 : index
      %19 = vector.load %arg8[%c0_16, %c0_17] : memref<8x128xf32, #tpu.memory_space<vmem>>, vector<8x128xf32>
      %c0_18 = arith.constant 0 : index
      %c0_19 = arith.constant 0 : index
      %20 = vector.load %arg7[%c0_18, %c0_19] : memref<8x128xf32, #tpu.memory_space<vmem>>, vector<8x128xf32>
      tpu.vector_store %arg7[%c0_18, %c0_19], %19 {strides = array<i32>} : memref<8x128xf32, #tpu.memory_space<vmem>>, vector<8x128xf32>,
    } else {
    }
    return
  }
  func.func @transform_0(%arg0: i32, %arg1: i32) -> (i32, i32) {
    %c0_i32 = arith.constant 0 : i32
    %c0_i32_0 = arith.constant 0 : i32
    return %arg0, %c0_i32 : i32, i32
  }
  func.func @transform_1(%arg0: i32, %arg1: i32) -> (i32, i32) {
    %c0_i32 = arith.constant 0 : i32
    %c0_i32_0 = arith.constant 0 : i32
    return %c0_i32, %arg1 : i32, i32
  }
  func.func @transform_2(%arg0: i32, %arg1: i32) -> (i32, i32) {
    %c0_i32 = arith.constant 0 : i32
    %c0_i32_0 = arith.constant 0 : i32
    return %c0_i32, %arg1 : i32, i32
  }
  func.func @transform_3(%arg0: i32, %arg1: i32) -> (i32, i32) {
    %c0_i32 = arith.constant 0 : i32
    %c0_i32_0 = arith.constant 0 : i32
    return %arg1, %c0_i32 : i32, i32
  }
  func.func @transform_4(%arg0: i32, %arg1: i32) -> (i32, i32) {
    %c0_i32 = arith.constant 0 : i32
    %c0_i32_0 = arith.constant 0 : i32
    %c0_i32_1 = arith.constant 0 : i32
    return %c0_i32, %c0_i32_0 : i32, i32
  }
  func.func @transform_5(%arg0: i32, %arg1: i32) -> (i32, i32) {
    %c0_i32 = arith.constant 0 : i32
    %c0_i32_0 = arith.constant 0 : i32
    return %arg0, %c0_i32 : i32, i32
  }
}

</mosaic_0001>

<bundles_post_ra>
// kernel: tpu_custom_call.1
= control target key start
LH: loop header
LB: loop body
LE: loop exit
PB: predicated region body
PF: predicated region fallthrough
CT: control target
= control target key end

     0   :  { %10 = vsyncpa [#allocation4], 0  ;;  %s343_s0 = inlined_call_operand.hbm [shape: f32[8,128], index: 0, kind: input, shape index: {}]   ;;  %s344_s1 = inlined_call_operand.hbm [shape: f32[128,128], index: 1, kind: input, shape index: {}]   ;;  %s345_s2 = inlined_call_operand.vmem [shape: f32[1,128], index: 2, kind: input, shape index: {}]   ;;  %s346_s3 = inlined_call_operand.hbm [shape: f32[128,128], index: 3, kind: input, shape index: {}]   ;;  %s347_s4 = inlined_call_operand.vmem [shape: f32[1,128], index: 4, kind: input, shape index: {}]   ;;  %s348_s5 = inlined_call_operand.hbm [shape: f32[8,128], index: 5, kind: output, shape index: {}]  }
   0x1   :  { %11 = vsyncpa [#allocation7], 0  ;;  %s28_s20 = sshll.u32 %s344_s1, 4  ;;  %s29_s20 = int_to_ptr.hbm [resolvable:$true] %s28_s20 }
   0x2   :  { %12 = vsyncpa [#allocation5], 0  ;;  %s289_s21 = smov [#allocation6]   ;;  %s18_s25 = sshll.u32 %s343_s0, 4  ;;  %s19_s25 = int_to_ptr.hbm [resolvable:$true] %s18_s25 }
   0x3   :  { %s30_s22 = sshll.u32 %s289_s21, 4  ;;  %s290_s26 = smov 128   ;;  %s31_s22 = int_to_ptr.vmem [resolvable:$true] %s30_s22 }
   0x4   :  { %s291_s27 = smov 8   ;;  %s292_s28 = smov [#allocation3]  }
   0x5   :  { %36 = dma.hbm_to_vmem [thread:$0]  %s29_s20, 2048, %s31_s22, [#allocation7], %s290_s26, %s290_s26, %s291_s27  }
   0x6   :  { %s20_s29 = sshll.u32 %s292_s28, 4  ;;  %s43_s7 = sshll.u32 %s346_s3, 4  ;;  %s21_s29 = int_to_ptr.vmem [resolvable:$true] %s20_s29  ;;  %s44_s7 = int_to_ptr.hbm [resolvable:$true] %s43_s7 }
   0x7   :  { %23 = dma.hbm_to_vmem [thread:$0]  %s19_s25, 128, %s21_s29, [#allocation4]  }
   0x8   :  { %s293_s1 = smov [#allocation8]  }
   0x9   :  { %s45_s8 = sshll.u32 %s293_s1, 4  ;;  %s46_s8 = int_to_ptr.vmem [resolvable:$true] %s45_s8 }
   0xa   :  { %51 = dma.hbm_to_vmem [thread:$0]  %s44_s7, 2048, %s46_s8, [#allocation7], %s290_s26, %s290_s26, %s291_s27  }
   0xb   :  { %283 = dma.done.wait [#allocation4], 128  }
   0xc   :  { %284 = vsyncadd [#allocation4], 4294967168 }
   0xd   :  { %285 = dma.done.wait [#allocation7], 4096  }
   0xe   :  { %286 = vsyncadd [#allocation7], 4294963200  ;;  %v91_v0 = vld [vmem:[#allocation6 + $0x78] sm:$0xff]  ;;  %v90_v1 = vld [vmem:[#allocation6 + $0x70] sm:$0xff]  ;;  %s294_s11 = smov [#allocation9]   ;;  %s168_s15 = sshll.u32 %s348_s5, 4  ;;  %s169_s15 = int_to_ptr.hbm [resolvable:$true] %s168_s15 }
   0xf   :  { %96 = vmatpush.msra.mxu0 %v91_v0  ;;  %v89_v2 = vld [vmem:[#allocation6 + $0x68] sm:$0xff]  ;;  %v88_v3 = vld [vmem:[#allocation6 + $0x60] sm:$0xff]  ;;  %v133_v4 = vld [vmem:[#allocation8 + $0x78] sm:$0xff]  ;;  %s166_s12 = sshll.u32 %s294_s11, 4  ;;  %s167_s12 = int_to_ptr.vmem [resolvable:$true] %s166_s12 }
  0x10   :  { %v87_v5 = vld [vmem:[#allocation6 + $0x58] sm:$0xff]  ;;  %134 = vmatpush.msra.mxu1 %v133_v4  ;;  %v132_v6 = vld [vmem:[#allocation8 + $0x70] sm:$0xff]  ;;  %v131_v7 = vld [vmem:[#allocation8 + $0x68] sm:$0xff] }
  0x11   :  { %97 = vmatpush.msra.mxu0 %v90_v1  ;;  %v86_v8 = vld [vmem:[#allocation6 + $0x50] sm:$0xff]  ;;  %v130_v9 = vld [vmem:[#allocation8 + $0x60] sm:$0xff]  ;;  %v85_v10 = vld [vmem:[#allocation6 + $0x48] sm:$0xff] }
  0x12   :  { %135 = vmatpush.msra.mxu1 %v132_v6  ;;  %v129_v11 = vld [vmem:[#allocation8 + $0x58] sm:$0xff]  ;;  %v84_v12 = vld [vmem:[#allocation6 + $0x40] sm:$0xff]  ;;  %v128_v13 = vld [vmem:[#allocation8 + $0x50] sm:$0xff] }
  0x13   :  { %98 = vmatpush.msra.mxu0 %v89_v2  ;;  %v83_v14 = vld [vmem:[#allocation6 + $0x38] sm:$0xff]  ;;  %v127_v15 = vld [vmem:[#allocation8 + $0x48] sm:$0xff]  ;;  %v82_v16 = vld [vmem:[#allocation6 + $0x30] sm:$0xff] }
  0x14   :  { %136 = vmatpush.msra.mxu1 %v131_v7  ;;  %v126_v17 = vld [vmem:[#allocation8 + $0x40] sm:$0xff]  ;;  %v81_v18 = vld [vmem:[#allocation6 + $0x28] sm:$0xff]  ;;  %v125_v19 = vld [vmem:[#allocation8 + $0x38] sm:$0xff] }
  0x15   :  { %99 = vmatpush.msra.mxu0 %v88_v3  ;;  %v80_v20 = vld [vmem:[#allocation6 + $0x20] sm:$0xff]  ;;  %v124_v21 = vld [vmem:[#allocation8 + $0x30] sm:$0xff]  ;;  %v79_v22 = vld [vmem:[#allocation6 + $0x18] sm:$0xff] }
  0x16   :  { %137 = vmatpush.msra.mxu1 %v130_v9  ;;  %v123_v23 = vld [vmem:[#allocation8 + $0x28] sm:$0xff]  ;;  %v78_v24 = vld [vmem:[#allocation6 + $0x10] sm:$0xff]  ;;  %v122_v25 = vld [vmem:[#allocation8 + $0x20] sm:$0xff] }
  0x17   :  { %100 = vmatpush.msra.mxu0 %v87_v5  ;;  %v77_v26 = vld [vmem:[#allocation6 + $0x8] sm:$0xff]  ;;  %v121_v27 = vld [vmem:[#allocation8 + $0x18] sm:$0xff]  ;;  %v76_v28 = vld [vmem:[#allocation6] sm:$0xff] }
  0x18   :  { %138 = vmatpush.msra.mxu1 %v129_v11  ;;  %v75_v29 = vld [vmem:[#allocation3] sm:$0xff]  ;;  %v120_v30 = vld [vmem:[#allocation8 + $0x10] sm:$0xff]  ;;  %v119_v31 = vld [vmem:[#allocation8 + $0x8] sm:$0xff] }
  0x19   :  { %101 = vmatpush.msra.mxu0 %v86_v8  ;;  %v118_v32 = vld [vmem:[#allocation8] sm:$0xff]  ;;  %v185_v33 = vld [vmem:[%s345_s2] ss:$0 sm:$0xff] }
  0x1a   :  { %139 = vmatpush.msra.mxu1 %v128_v13  ;;  %v186_v37 = vld [vmem:[%s347_s4] ss:$0 sm:$0xff] }
  0x1b   :  { %102 = vmatpush.msra.mxu0 %v85_v10 }
  0x1c   :  { %140 = vmatpush.msra.mxu1 %v127_v15 }
  0x1d   :  { %103 = vmatpush.msra.mxu0 %v84_v12 }
  0x1e   :  { %141 = vmatpush.msra.mxu1 %v126_v17 }
  0x1f   :  { %104 = vmatpush.msra.mxu0 %v83_v14 }
  0x20   :  { %142 = vmatpush.msra.mxu1 %v125_v19 }
  0x21   :  { %105 = vmatpush.msra.mxu0 %v82_v16 }
  0x22   :  { %143 = vmatpush.msra.mxu1 %v124_v21 }
  0x23   :  { %106 = vmatpush.msra.mxu0 %v81_v18 }
  0x24   :  { %144 = vmatpush.msra.mxu1 %v123_v23 }
  0x25   :  { %107 = vmatpush.msra.mxu0 %v80_v20 }
  0x26   :  { %145 = vmatpush.msra.mxu1 %v122_v25 }
  0x27   :  { %108 = vmatpush.msra.mxu0 %v79_v22 }
  0x28   :  { %146 = vmatpush.msra.mxu1 %v121_v27 }
  0x29   :  { %109 = vmatpush.msra.mxu0 %v78_v24 }
  0x2a   :  { %147 = vmatpush.msra.mxu1 %v120_v30 }
  0x2b   :  { %110 = vmatpush.msra.mxu0 %v77_v26 }
  0x2c   :  { %148 = vmatpush.msra.mxu1 %v119_v31 }
  0x2d   :  { %111 = vmatpush.msra.mxu0 %v76_v28 }
  0x2e   :  { %112 = vmatmul.f32.vlgmr.msra.gmra.mxu0 %v75_v29  ;;  %149 = vmatpush.msra.mxu1 %v118_v32 }
  0xab   :  { %v113_v34 = vpop.f32.mrf.mxu0 }
  0xac   :  { %v114_v35 = vadd.f32 %v185_v33, %v113_v34 }
  0xae   :  { %v116_v36 = vmax.f32 %v114_v35, 0.0 }
  0xb0   :  { %150 = vmatmul.f32.vlgmr.msra.gmra.mxu1 %v116_v36 }
 0x12d   :  { %v151_v38 = vpop.f32.mrf.mxu1 }
 0x12e   :  { %v154_v39 = vadd.f32 %v186_v37, %v151_v38 }
 0x130   :  { %160 = vst [vmem:[#allocation9] sm:$0xff] %v154_v39 }
 0x131   :  { %171 = dma.vmem_to_hbm [thread:$0]  %s167_s12, 128, %s169_s15, [#allocation5]  }
 0x132   :  { %287 = dma.done.wait [#allocation5], 128  }
 0x133   :  { %288 = vsyncadd [#allocation5], 4294967168 }
 0x134   :  { %176 = vsyncpa [#allocation4], 1 }
 0x135   :  { %177 = vsyncpa [#allocation7], 1 }
 0x136   :  { %178 = vsyncpa [#allocation5], 1 }

</bundles_post_ra>
